<compile_context>
chip_gen: v7x
topology: tpu7x:2x2x1
jax: 0.10.0
libtpu: 0.0.40
codegen_flags: <defaults>
</compile_context>

<pallas_src>
import functools

import jax
import jax.numpy as jnp
from jax.experimental import pallas as pl
from jax.experimental.pallas import tpu as pltpu  # noqa: F401  (TPU backend)

# ----------------------- config (GLM4V-like, small) -----------------------
NUM_LAYERS = 2
KV_CHANNELS = 16
MULTI_QUERY_GROUP_NUM = 2
KV_SIZE = NUM_LAYERS * KV_CHANNELS * MULTI_QUERY_GROUP_NUM * 2   # 128 (lane-dense)
HIDDEN_SIZE = 64
PRE_SEQ_LEN = 16
BATCH = 2
PREFIX_LEN = 8
PREFIX_PROJECTION = True


# ----------------------------- Pallas kernels ------------------------------
def prefix_encoder_proj_kernel(idx_ref, emb_ref, w1_ref, b1_ref, w2_ref, b2_ref, o_ref):
    """Fused: embedding gather -> Linear(kv->hidden) -> tanh -> Linear(hidden->kv).

    idx: (M, 1) int32   emb: (P, KV)   w1: (KV, H)  b1: (1, H)
    w2:  (H, KV)        b2: (1, KV)    o:  (M, KV)
    """
    M = idx_ref.shape[0]
    P = emb_ref.shape[0]
    # Embedding lookup as a one-hot matmul (MXU-friendly; avoids scattered loads).
    iota = jax.lax.broadcasted_iota(jnp.int32, (M, P), 1)
    onehot = (iota == idx_ref[...]).astype(jnp.float32)
    tokens = jnp.dot(onehot, emb_ref[...].astype(jnp.float32),
                     preferred_element_type=jnp.float32)              # (M, KV)
    # trans = Linear -> Tanh -> Linear, all in VMEM / fp32.
    h = jnp.tanh(jnp.dot(tokens, w1_ref[...].astype(jnp.float32),
                         preferred_element_type=jnp.float32)
                 + b1_ref[...].astype(jnp.float32))                   # (M, H)
    out = (jnp.dot(h, w2_ref[...].astype(jnp.float32),
                   preferred_element_type=jnp.float32)
           + b2_ref[...].astype(jnp.float32))                         # (M, KV)
    o_ref[...] = out.astype(o_ref.dtype)


def prefix_encoder_embed_kernel(idx_ref, emb_ref, o_ref):
    """prefix_projection=False path: plain embedding lookup (one-hot matmul gather)."""
    M = idx_ref.shape[0]
    P = emb_ref.shape[0]
    iota = jax.lax.broadcasted_iota(jnp.int32, (M, P), 1)
    onehot = (iota == idx_ref[...]).astype(jnp.float32)
    out = jnp.dot(onehot, emb_ref[...].astype(jnp.float32),
                  preferred_element_type=jnp.float32)
    o_ref[...] = out.astype(o_ref.dtype)


# ------------------------------- wrapper ------------------------------------
def prefix_encoder_forward(params, prefix, *, prefix_projection=PREFIX_PROJECTION):
    """prefix: (batch, prefix_len) int32 -> (batch, prefix_len, kv_size)."""
    B, L = prefix.shape
    M = B * L
    idx = prefix.reshape(M, 1).astype(jnp.int32)
    emb = params["embedding"]                    # (PRE_SEQ_LEN, KV_SIZE)
    P, KV = emb.shape

    if prefix_projection:
        w1, b1 = params["w1"], params["b1"]      # (KV, H), (1, H)   (torch W1 pre-transposed)
        w2, b2 = params["w2"], params["b2"]      # (H, KV), (1, KV)  (torch W2 pre-transposed)
        H = w1.shape[1]
        out = pl.pallas_call(
            prefix_encoder_proj_kernel,
            out_shape=jax.ShapeDtypeStruct((M, KV), emb.dtype),
            in_specs=[
                pl.BlockSpec((M, 1), lambda: (0, 0)),
                pl.BlockSpec((P, KV), lambda: (0, 0)),
                pl.BlockSpec((KV, H), lambda: (0, 0)),
                pl.BlockSpec((1, H), lambda: (0, 0)),
                pl.BlockSpec((H, KV), lambda: (0, 0)),
                pl.BlockSpec((1, KV), lambda: (0, 0)),
            ],
            out_specs=pl.BlockSpec((M, KV), lambda: (0, 0)),
        )(idx, emb, w1, b1, w2, b2)
    else:
        out = pl.pallas_call(
            prefix_encoder_embed_kernel,
            out_shape=jax.ShapeDtypeStruct((M, KV), emb.dtype),
            in_specs=[
                pl.BlockSpec((M, 1), lambda: (0, 0)),
                pl.BlockSpec((P, KV), lambda: (0, 0)),
            ],
            out_specs=pl.BlockSpec((M, KV), lambda: (0, 0)),
        )(idx, emb)

    return out.reshape(B, L, KV)


# ------------------------------ reference -----------------------------------
def prefix_encoder_reference(params, prefix, *, prefix_projection=PREFIX_PROJECTION):
    tokens = params["embedding"][prefix]                               # (B, L, KV)
    if not prefix_projection:
        return tokens
    h = jnp.tanh(tokens @ params["w1"] + params["b1"][0])
    return h @ params["w2"] + params["b2"][0]


# --------------------------------- main -------------------------------------
if __name__ == "__main__":
    key = jax.random.PRNGKey(0)
    k_emb, k_w1, k_b1, k_w2, k_b2, k_idx = jax.random.split(key, 6)

    # Deterministic parameters. torch.nn.Linear weights are (out, in); we store
    # them pre-transposed as (in, out) so all kernel matmuls contract on the
    # last axis with no in-kernel transpose.
    params = {
        "embedding": jax.random.normal(k_emb, (PRE_SEQ_LEN, KV_SIZE), jnp.float32) * 0.02,
        "w1": jax.random.normal(k_w1, (KV_SIZE, HIDDEN_SIZE), jnp.float32)
              * (1.0 / jnp.sqrt(jnp.float32(KV_SIZE))),
        "b1": jax.random.normal(k_b1, (1, HIDDEN_SIZE), jnp.float32) * 0.02,
        "w2": jax.random.normal(k_w2, (HIDDEN_SIZE, KV_SIZE), jnp.float32)
              * (1.0 / jnp.sqrt(jnp.float32(HIDDEN_SIZE))),
        "b2": jax.random.normal(k_b2, (1, KV_SIZE), jnp.float32) * 0.02,
    }

    prefix = jax.random.randint(k_idx, (BATCH, PREFIX_LEN), 0, PRE_SEQ_LEN, jnp.int32)

    fwd_proj = jax.jit(functools.partial(prefix_encoder_forward, prefix_projection=True))
    fwd_embed = jax.jit(functools.partial(prefix_encoder_forward, prefix_projection=False))

    out_proj = fwd_proj(params, prefix)
    out_embed = fwd_embed(params, prefix)
    jax.block_until_ready((out_proj, out_embed))

    assert out_proj.shape == (BATCH, PREFIX_LEN, KV_SIZE)
    assert out_embed.shape == (BATCH, PREFIX_LEN, KV_SIZE)
    assert bool(jnp.all(jnp.isfinite(out_proj)))

    ref_proj = prefix_encoder_reference(params, prefix, prefix_projection=True)
    ref_embed = prefix_encoder_reference(params, prefix, prefix_projection=False)
    assert bool(jnp.allclose(out_proj, ref_proj, atol=1e-2, rtol=1e-2))
    assert bool(jnp.allclose(out_embed, ref_embed, atol=1e-5, rtol=1e-5))

    print("KERNEL_OK")
</pallas_src>

<mosaic_0001>
module attributes {stable_mosaic.version = 11 : i64} {
  func.func @prefix_encoder_proj_kernel(%arg0: memref<16x1xi32, #tpu.memory_space<vmem>>, %arg1: memref<16x128xf32, #tpu.memory_space<vmem>>, %arg2: memref<128x64xf32, #tpu.memory_space<vmem>>, %arg3: memref<1x64xf32, #tpu.memory_space<vmem>>, %arg4: memref<64x128xf32, #tpu.memory_space<vmem>>, %arg5: memref<1x128xf32, #tpu.memory_space<vmem>>, %arg6: memref<16x128xf32, #tpu.memory_space<vmem>>) attributes {dimension_semantics = [], scalar_prefetch = 0 : i64, scratch_operands = 0 : i64, tpu.core_type = #tpu.core_type<tc>} {
    %0 = tpu.iota {dimensions = array<i32: 1>} : vector<16x16xi32>
    %c0 = arith.constant 0 : index
    %c0_0 = arith.constant 0 : index
    %1 = vector.load %arg0[%c0, %c0_0] : memref<16x1xi32, #tpu.memory_space<vmem>>, vector<16x1xi32>
    %2 = vector.broadcast %1 : vector<16x1xi32> to vector<16x16xi32>
    %3 = arith.cmpi eq, %0, %2 : vector<16x16xi32>
    %4 = arith.extui %3 : vector<16x16xi1> to vector<16x16xi32>
    %5 = arith.sitofp %4 : vector<16x16xi32> to vector<16x16xf32>
    %c0_1 = arith.constant 0 : index
    %c0_2 = arith.constant 0 : index
    %6 = vector.load %arg1[%c0_1, %c0_2] : memref<16x128xf32, #tpu.memory_space<vmem>>, vector<16x128xf32>
    %cst = arith.constant dense<0.000000e+00> : vector<16x128xf32>
    %7 = tpu.matmul %5, %6, %cst {dimension_numbers = #tpu.dot_dimension_numbers<[1], [0], [0], [1], [0, 0, 1, 1], [], []>} : vector<16x16xf32>, vector<16x128xf32>, vector<16x128xf32> -> vector<16x128xf32>
    %c0_3 = arith.constant 0 : index
    %c0_4 = arith.constant 0 : index
    %8 = vector.load %arg2[%c0_3, %c0_4] : memref<128x64xf32, #tpu.memory_space<vmem>>, vector<128x64xf32>
    %cst_5 = arith.constant dense<0.000000e+00> : vector<16x64xf32>
    %9 = tpu.matmul %7, %8, %cst_5 {dimension_numbers = #tpu.dot_dimension_numbers<[1], [0], [0], [1], [0, 0, 1, 1], [], []>} : vector<16x128xf32>, vector<128x64xf32>, vector<16x64xf32> -> vector<16x64xf32>
    %c0_6 = arith.constant 0 : index
    %c0_7 = arith.constant 0 : index
    %10 = vector.load %arg3[%c0_6, %c0_7] : memref<1x64xf32, #tpu.memory_space<vmem>>, vector<1x64xf32>
    %11 = vector.broadcast %10 : vector<1x64xf32> to vector<16x64xf32>
    %12 = arith.addf %9, %11 : vector<16x64xf32>
    %13 = math.tanh %12 : vector<16x64xf32>
    %c0_8 = arith.constant 0 : index
    %c0_9 = arith.constant 0 : index
    %14 = vector.load %arg4[%c0_8, %c0_9] : memref<64x128xf32, #tpu.memory_space<vmem>>, vector<64x128xf32>
    %cst_10 = arith.constant dense<0.000000e+00> : vector<16x128xf32>
    %15 = tpu.matmul %13, %14, %cst_10 {dimension_numbers = #tpu.dot_dimension_numbers<[1], [0], [0], [1], [0, 0, 1, 1], [], []>} : vector<16x64xf32>, vector<64x128xf32>, vector<16x128xf32> -> vector<16x128xf32>
    %c0_11 = arith.constant 0 : index
    %c0_12 = arith.constant 0 : index
    %16 = vector.load %arg5[%c0_11, %c0_12] : memref<1x128xf32, #tpu.memory_space<vmem>>, vector<1x128xf32>
    %17 = vector.broadcast %16 : vector<1x128xf32> to vector<16x128xf32>
    %18 = arith.addf %15, %17 : vector<16x128xf32>
    %c0_13 = arith.constant 0 : index
    %c0_14 = arith.constant 0 : index
    %19 = vector.load %arg6[%c0_13, %c0_14] : memref<16x128xf32, #tpu.memory_space<vmem>>, vector<16x128xf32>
    tpu.vector_store %arg6[%c0_13, %c0_14], %18 {strides = array<i32>} : memref<16x128xf32, #tpu.memory_space<vmem>>, vector<16x128xf32>,
    return
  }
}

</mosaic_0001>

<bundles_post_ra>
// kernel: prefix_encoder_forward.1
= control target key start
LH: loop header
LB: loop body
LE: loop exit
PB: predicated region body
PF: predicated region fallthrough
CT: control target
= control target key end

     0   :  { %s668_s0 = inlined_call_operand.vmem [shape: s32[16,1], index: 0, kind: input, shape index: {}]   ;;  %s669_s1 = inlined_call_operand.vmem [shape: f32[16,128], index: 1, kind: input, shape index: {}]   ;;  %s670_s2 = inlined_call_operand.vmem [shape: f32[128,64], index: 2, kind: input, shape index: {}]   ;;  %s671_s3 = inlined_call_operand.vmem [shape: f32[1,64], index: 3, kind: input, shape index: {}]   ;;  %s672_s4 = inlined_call_operand.vmem [shape: f32[64,128], index: 4, kind: input, shape index: {}]   ;;  %s673_s5 = inlined_call_operand.vmem [shape: f32[1,128], index: 5, kind: input, shape index: {}]   ;;  %s674_s6 = inlined_call_operand.hbm [shape: f32[16,128], index: 6, kind: output, shape index: {}]  }
   0x1   :  { %v26_v0 = vld [vmem:[%s668_s0] sm:$0xff] }
   0x2   :  { %11 = vsyncpa [#allocation3], 0  ;;  %v526_v1 = vmov 0   ;;  %v40_v2 = vld [vmem:[%s669_s1] sm:$0xff]  ;;  %v41_v3 = vld [vmem:[%s669_s1 + $0x8] sm:$0xff]  ;;  %v24_v30 = vlaneseq  ;;  %vm42_vm0 = vcmask 130048  }
   0x3   :  { %497 = vset.pattern.permute.xlu0 %v526_v1  ;;  %v440_v4 = vpack.c.bf16 %v41_v3, %v40_v2  ;;  %v27_v5 = vld [vmem:[%s668_s0 + $0x8] sm:$0xff]  ;;  %v124_v6 = vld [vmem:[%s670_s2] sm:$0xff]  ;;  %v126_v8 = vld [vmem:[%s670_s2 + $0x10] sm:$0xff]  ;;  %v527_v33 = vmov 0.0   ;;  %vm239_vm3 = vcmask 523264   ;;  %s528_s27 = smov [#allocation2]  }
   0x4   :  { %29 = vperm.xlu0 %497, %v26_v0   ;;  %v125_v7 = vld [vmem:[%s670_s2 + $0x8] sm:$0xff]  ;;  %v127_v10 = vld [vmem:[%s670_s2 + $0x18] sm:$0xff]  ;;  %v128_v12 = vld [vmem:[%s670_s2 + $0x20] sm:$0xff]  ;;  %v25_v31 = vand.u32 127, %v24_v30  ;;  %s328_s28 = sshll.u32 %s528_s27, 4  ;;  %s329_s28 = int_to_ptr.vmem [resolvable:$true] %s328_s28 }
   0x5   :  { %441 = vmatprep.subr.bf16.mxu0 %v440_v4  ;;  %v444_v9 = vpack.c.bf16 %v125_v7, %v124_v6  ;;  %v448_v11 = vpack.c.bf16 %v127_v10, %v126_v8  ;;  %v129_v13 = vld [vmem:[%s670_s2 + $0x28] sm:$0xff]  ;;  %v130_v15 = vld [vmem:[%s670_s2 + $0x30] sm:$0xff]  ;;  %v131_v16 = vld [vmem:[%s670_s2 + $0x38] sm:$0xff]  ;;  %p507_p1 = scmp.lt.s32.totalorder %s329_s28, %s329_s28 }
   0x6   :  { %443 = vmatpush3.bf16.msra.mxu0 %v440_v4  ;;  %v452_v14 = vpack.c.bf16 %v129_v13, %v128_v12  ;;  %v456_v17 = vpack.c.bf16 %v131_v16, %v130_v15  ;;  %v132_v18 = vld [vmem:[%s670_s2 + $0x40] sm:$0xff]  ;;  %v133_v19 = vld [vmem:[%s670_s2 + $0x48] sm:$0xff]  ;;  %v134_v21 = vld [vmem:[%s670_s2 + $0x50] sm:$0xff] }
   0x7   :  { %445 = vmatprep.subr.bf16.mxu1 %v444_v9  ;;  %v460_v20 = vpack.c.bf16 %v133_v19, %v132_v18  ;;  %v135_v22 = vld [vmem:[%s670_s2 + $0x58] sm:$0xff]  ;;  %v136_v24 = vld [vmem:[%s670_s2 + $0x60] sm:$0xff]  ;;  %v137_v25 = vld [vmem:[%s670_s2 + $0x68] sm:$0xff] }
   0x8   :  { %32 = vperm.xlu0 %497, %v27_v5   ;;  %447 = vmatpush3.bf16.msra.mxu1 %v444_v9  ;;  %v464_v23 = vpack.c.bf16 %v135_v22, %v134_v21  ;;  %v468_v26 = vpack.c.bf16 %v137_v25, %v136_v24  ;;  %v138_v27 = vld [vmem:[%s670_s2 + $0x70] sm:$0xff]  ;;  %v139_v28 = vld [vmem:[%s670_s2 + $0x78] sm:$0xff]  ;;  %v224_v39 = vld [vmem:[%s672_s4] sm:$0xff] }
   0x9   :  { %449 = vmatprep.subr.bf16.mxu1 %v448_v11  ;;  %v472_v29 = vpack.c.bf16 %v139_v28, %v138_v27  ;;  %v225_v40 = vld [vmem:[%s672_s4 + $0x8] sm:$0xff]  ;;  %v226_v42 = vld [vmem:[%s672_s4 + $0x10] sm:$0xff]  ;;  %v227_v43 = vld [vmem:[%s672_s4 + $0x18] sm:$0xff] }
   0xa   :  { %v476_v41 = vpack.c.bf16 %v225_v40, %v224_v39  ;;  %v480_v44 = vpack.c.bf16 %v227_v43, %v226_v42  ;;  %v228_v45 = vld [vmem:[%s672_s4 + $0x20] sm:$0xff]  ;;  %v229_v46 = vld [vmem:[%s672_s4 + $0x28] sm:$0xff]  ;;  %v230_v47 = vld [vmem:[%s672_s4 + $0x30] sm:$0xff] }
   0xb   :  { %v484_v48 = vpack.c.bf16 %v229_v46, %v228_v45  ;;  %v231_v49 = vld [vmem:[%s672_s4 + $0x38] sm:$0xff]  ;;  %v343_v51 = vld [vmem:[%s671_s3] ss:$0 sm:$0xff]  ;;  %s502_s3 = scalar_lea.vmem %s329_s28, 256 }
   0xc   :  { %451 = vmatpush3.bf16.msra.mxu1 %v448_v11  ;;  %477 = vmatprep.subr.bf16.mxu0 %v476_v41  ;;  %v488_v50 = vpack.c.bf16 %v231_v49, %v230_v47  ;;  %v344_v58 = vld [vmem:[%s673_s5] ss:$0 sm:$0xff]  ;;  %p503_p0 = scmp.ne.s32.totalorder %s329_s28, %s502_s3  ;;  %p508_p2 = scmp.lt.s32.totalorder %s502_s3, %s502_s3 }
   0xd   :  { %453 = vmatprep.subr.bf16.mxu1 %v452_v14 }
   0xe   :  { %p509_p3 = por %p508_p2, %p507_p1 }
  0x10   :  { %455 = vmatpush3.bf16.msra.mxu1 %v452_v14  ;;  %p510_p4 = pnand %p509_p3, %p503_p0 }
  0x11   :  { %457 = vmatprep.subr.bf16.mxu1 %v456_v17 }
  0x14   :  { %459 = vmatpush3.bf16.msra.mxu1 %v456_v17 }
  0x15   :  { %461 = vmatprep.subr.bf16.mxu1 %v460_v20 }
  0x18   :  { %463 = vmatpush3.bf16.msra.mxu1 %v460_v20 }
  0x19   :  { %465 = vmatprep.subr.bf16.mxu1 %v464_v23 }
  0x1c   :  { %467 = vmatpush3.bf16.msra.mxu1 %v464_v23 }
  0x1d   :  { %469 = vmatprep.subr.bf16.mxu1 %v468_v26 }
  0x20   :  { %471 = vmatpush3.bf16.msra.mxu1 %v468_v26 }
  0x21   :  { %473 = vmatprep.subr.bf16.mxu1 %v472_v29 }
  0x24   :  { %475 = vmatpush3.bf16.msra.mxu1 %v472_v29 }
  0x83   :  { %v30_v32 = vpop.permute.xlu0 %29 }
  0x84   :  { %vm34_vm1 = vcmp.eq.s32.totalorder %v25_v31, %v30_v32 }
  0x85   :  { %v339_v34 = vsel %vm34_vm1, 1.0, %v527_v33 }
  0x86   :  { %383 = vmatprep.mubr.msk.f32.mxu0 %vm42_vm0, %v339_v34 }
  0x87   :  { %v33_v35 = vpop.permute.xlu0 %32 }
  0x88   :  { %vm35_vm2 = vcmp.eq.s32.totalorder %v25_v31, %v33_v35 }
  0x89   :  { %v340_v36 = vsel %vm35_vm2, 1.0, %v527_v33 }
  0x8a   :  { %384 = vmatmul.mubr.msk.f32.vlgmr.msra.gmra.mrb[0].mxu0 %vm42_vm0, %v340_v36 }
  0x8b   :  { %479 = vmatpush3.bf16.msra.mxu0 %v476_v41 }
  0x8c   :  { %481 = vmatprep.subr.bf16.mxu0 %v480_v44 }
  0x8f   :  { %483 = vmatpush3.bf16.msra.mxu0 %v480_v44 }
  0x90   :  { %485 = vmatprep.subr.bf16.mxu0 %v484_v48 }
  0x93   :  { %487 = vmatpush3.bf16.msra.mxu0 %v484_v48 }
  0x94   :  { %489 = vmatprep.subr.bf16.mxu0 %v488_v50 }
  0x97   :  { %491 = vmatpush3.bf16.msra.mxu0 %v488_v50 }
 0x15d   :  { %v385_v37 = vpop.f32.mrb[0].mxu0 }
 0x15e   :  { %v115_v38 = vpop.f32.mrb[1].mxu0 }
 0x15f   :  { %418 = vmatprep.mubr.f32.mxu1 %v115_v38 }
 0x160   :  { %419 = vmatmul.mubr.f32.vlgmr.msra.gmra.mrb[0].mxu1 %v385_v37 }
 0x233   :  { %v420_v52 = vpop.f32.mrb[0].mxu1 }
 0x234   :  { %v219_v53 = vadd.f32 %v420_v52, %v343_v51  ;;  %v213_v54 = vpop.f32.mrb[1].mxu1 }
 0x235   :  { %v214_v55 = vadd.f32 %v343_v51, %v213_v54 }
 0x237   :  { %498 = vtanh.f32 %v214_v55 }
 0x238   :  { %500 = vtanh.f32 %v219_v53 }
 0x241   :  { %v499_v56 = vpop.eup %498 }
 0x242   :  { %v501_v57 = vpop.eup %500  ;;  %437 = vmatprep.mubr.msk.f32.mxu0 %vm239_vm3, %v499_v56 }
 0x243   :  { %438 = vmatmul.mubr.msk.f32.vlgmr.msra.gmra.mrb[2].mxu0 %vm239_vm3, %v501_v57 }
 0x316   :  { %v439_v59 = vpop.f32.mrb[2].mxu0 }
 0x317   :  { %v318_v60 = vadd.f32 %v439_v59, %v344_v58  ;;  %v312_v61 = vpop.f32.mrb[3].mxu0 }
 0x318   :  { %v313_v62 = vadd.f32 %v344_v58, %v312_v61 }
 0x319   :  { %322 = vst [vmem:[#allocation2 + $0x8] sm:$0xff] %v318_v60 }
 0x31a   :  { %321 = vst [vmem:[#allocation2] sm:$0xff] %v313_v62 }
 0x31b   :  { %513 = shalt.err (!%p510_p4)
}
 0x31c   :  { %s514_s5 = scalar_lea.hbm %s674_s6, 256 }
 0x31d   :  { %p515_p5 = scmp.ne.s32.totalorder %s674_s6, %s514_s5  ;;  %p518_p6 = scmp.lt.u32.totalorder %s514_s5, %s674_s6 }
 0x31f   :  { %p520_p7 = pnand %p518_p6, %p515_p5 }
 0x321   :  { %523 = shalt.err (!%p520_p7)
}
 0x322   :  { %s529_s2 = smov 128   ;;  %s530_s1 = smov 8  }
 0x323   :  { %334 = dma.vmem_to_hbm [thread:$0]  %s329_s28, 256, %s674_s6, [#allocation3], %s529_s2, %s529_s2, %s530_s1  }
 0x324   :  { %524 = dma.done.wait [#allocation3], 256  }
 0x325   :  { %525 = vsyncadd [#allocation3], 4294967040 }
 0x326   :  { %338 = vsyncpa [#allocation3], 1 }

</bundles_post_ra>
